<compile_context>
chip_gen: v7x
topology: tpu7x:2x2x1
jax: 0.10.0
libtpu: 0.0.40
codegen_flags: <defaults>
</compile_context>

<pallas_src>
import jax
import jax.numpy as jnp
from jax.experimental import pallas as pl
from jax.experimental.pallas import tpu as pltpu


def deepfm_kernel(packed_ref, r_ref, w1_ref, b1_ref, w2_ref, b2_ref,
                  bias_ref, out_ref):
    # packed_ref: (TB, 2*FK + 2*F) = [e2_flat | xv_rep | e1 | xv]
    # r_ref: (FK, K) constant field-sum matrix, w1_ref: (FK, H1),
    # b1_ref: (1, H1), w2_ref: (H1, H2), b2_ref: (1, H2),
    # bias_ref: (1, 1) in SMEM, out_ref: (TB, 1)
    FK = r_ref.shape[0]
    F = (packed_ref.shape[1] - 2 * FK) // 2

    packed = packed_ref[...]
    e2_flat = packed[:, :FK]                 # (TB, FK) raw 2nd-order embeddings
    xv_rep = packed[:, FK:2 * FK]            # (TB, FK) feature values, repeated K
    e1 = packed[:, 2 * FK:2 * FK + F]        # (TB, F)  1st-order embeddings
    xv = packed[:, 2 * FK + F:]              # (TB, F)  feature values

    # FM first order (dropout = identity in eval mode).
    first = e1 * xv                                           # (TB, F)
    first_sum = jnp.sum(first, axis=1, keepdims=True)         # (TB, 1)

    # Scaled second-order embeddings, flattened lane-dense.
    e2s = e2_flat * xv_rep                                    # (TB, FK)

    # FM second order: only its row-sum is needed.
    #   sum_k fm2_k = 0.5 * ( ||sum_f v_f||^2 - sum_{f,k} v_fk^2 )
    sum_e = jnp.dot(e2s, r_ref[...],
                    preferred_element_type=jnp.float32)       # (TB, K) field-sum on MXU
    fm2_sum = 0.5 * (jnp.sum(sum_e * sum_e, axis=1, keepdims=True)
                     - jnp.sum(e2s * e2s, axis=1, keepdims=True))  # (TB, 1)

    # Deep part: single matmul against the flattened W1, then the 2nd layer.
    # TODO(synk): dropout layers are identity in eval mode and are omitted.
    h = jnp.dot(e2s, w1_ref[...], preferred_element_type=jnp.float32)
    h = jnp.maximum(h + b1_ref[...], 0.0)                     # (TB, H1)
    h = jnp.dot(h, w2_ref[...], preferred_element_type=jnp.float32)
    h = jnp.maximum(h + b2_ref[...], 0.0)                     # (TB, H2)
    deep_sum = jnp.sum(h, axis=1, keepdims=True)              # (TB, 1)

    out_ref[...] = first_sum + fm2_sum + deep_sum + bias_ref[0, 0]


def deepfm_forward(Xi, Xv, emb1, emb2, w1, b1, w2, b2, bias, *, tile_b=None):
    """DeepFM eval-mode forward. Xi: (N, F) int ids, Xv: (N, F) f32 values."""
    N, F = Xv.shape
    K = emb2.shape[-1]
    FK = F * K
    H1 = w1.shape[1]
    H2 = w2.shape[1]

    # --- plain-JAX glue: data-dependent embedding gather + lane-dense packing
    fidx = jnp.arange(F)[None, :]                       # (1, F)
    e1 = emb1[fidx, Xi, 0].astype(jnp.float32)          # (N, F)
    e2_flat = emb2[fidx, Xi].astype(jnp.float32).reshape(N, FK)   # (N, F*K)
    xv = Xv.astype(jnp.float32)
    xv_rep = jnp.repeat(xv, K, axis=1)                  # (N, F*K): xv[:, f] at lanes f*K..f*K+K-1
    packed = jnp.concatenate([e2_flat, xv_rep, e1, xv], axis=1)   # (N, 2FK+2F)

    # Constant field-sum matrix: R[f*K + k, k'] = 1 iff k == k'.
    r_mat = jnp.tile(jnp.eye(K, dtype=jnp.float32), (F, 1))       # (FK, K)

    # --- batch tiling (multiple of 128 -> sublane aligned, many grid steps)
    if tile_b is None:
        tile_b = 1024 if N >= 1024 else 128
    n_tiles = pl.cdiv(N, tile_b)
    n_pad = n_tiles * tile_b
    if n_pad != N:
        packed = jnp.pad(packed, ((0, n_pad - N), (0, 0)))
    P = packed.shape[1]

    out = pl.pallas_call(
        deepfm_kernel,
        out_shape=jax.ShapeDtypeStruct((n_pad, 1), jnp.float32),
        grid=(n_tiles,),
        in_specs=[
            pl.BlockSpec((tile_b, P), lambda i: (i, 0)),      # packed per-row slab
            pl.BlockSpec((FK, K), lambda i: (0, 0)),          # field-sum matrix (resident)
            pl.BlockSpec((FK, H1), lambda i: (0, 0)),         # W1 (flattened, resident)
            pl.BlockSpec((1, H1), lambda i: (0, 0)),          # b1
            pl.BlockSpec((H1, H2), lambda i: (0, 0)),         # W2
            pl.BlockSpec((1, H2), lambda i: (0, 0)),          # b2
            pl.BlockSpec((1, 1), lambda i: (0, 0),
                         memory_space=pltpu.MemorySpace.SMEM),  # scalar bias
        ],
        out_specs=pl.BlockSpec((tile_b, 1), lambda i: (i, 0)),
        compiler_params=pltpu.CompilerParams(
            dimension_semantics=("parallel",),
            vmem_limit_bytes=32 * 1024 * 1024),
    )(packed, r_mat, w1, b1, w2, b2, bias)
    return out[:N, 0]


if __name__ == "__main__":
    # Small deterministic config consistent with DeepFM.__init__ defaults.
    N = 256                    # batch (module default batch_size)
    F = 8                      # field_size
    S = 10                     # each feature_size
    K = 4                      # embedding_size
    H1, H2 = 32, 32            # deep_layers

    key = jax.random.PRNGKey(0)
    keys = jax.random.split(key, 9)

    Xi = jax.random.randint(keys[0], (N, F), 0, S, dtype=jnp.int32)
    Xv = jax.random.normal(keys[1], (N, F), dtype=jnp.float32)

    # Parameters (deterministic synthetic init, same shapes as the module).
    emb1 = 0.1 * jax.random.normal(keys[2], (F, S, 1), jnp.float32)   # nn.Embedding(S,1) x F
    emb2 = 0.1 * jax.random.normal(keys[3], (F, S, K), jnp.float32)   # nn.Embedding(S,K) x F
    w1 = 0.1 * jax.random.normal(keys[4], (F * K, H1), jnp.float32)   # linear_1, stored (in,out)
    b1 = 0.1 * jax.random.normal(keys[5], (1, H1), jnp.float32)
    w2 = 0.1 * jax.random.normal(keys[6], (H1, H2), jnp.float32)      # linear_2, stored (in,out)
    b2 = 0.1 * jax.random.normal(keys[7], (1, H2), jnp.float32)
    bias = jax.random.normal(keys[8], (1, 1), jnp.float32)            # self.bias

    out = deepfm_forward(Xi, Xv, emb1, emb2, w1, b1, w2, b2, bias, tile_b=128)
    out = jax.block_until_ready(out)

    # Pure-JAX reference of the exact eval-mode forward semantics.
    fidx = jnp.arange(F)[None, :]
    e1 = emb1[fidx, Xi, 0]                              # (N, F)
    e2 = emb2[fidx, Xi]                                 # (N, F, K)
    first_ref = e1 * Xv
    e2s_ref = e2 * Xv[:, :, None]
    fm2_ref = 0.5 * (jnp.sum(e2s_ref, 1) ** 2 - jnp.sum(e2s_ref * e2s_ref, 1))
    deep_emb = e2s_ref.reshape(N, F * K)
    h_ref = jnp.maximum(deep_emb @ w1 + b1, 0.0)
    h_ref = jnp.maximum(h_ref @ w2 + b2, 0.0)
    total_ref = (jnp.sum(first_ref, 1) + jnp.sum(fm2_ref, 1)
                 + jnp.sum(h_ref, 1) + bias[0, 0])

    assert out.shape == (N,)
    max_err = float(jnp.max(jnp.abs(out - total_ref)))
    assert jnp.allclose(out, total_ref, atol=1e-3, rtol=1e-3), max_err
    print("KERNEL_OK")
</pallas_src>

<mosaic_0001>
module attributes {stable_mosaic.version = 11 : i64} {
  func.func @deepfm_kernel(%arg0: i32, %arg1: memref<128x80xf32, #tpu.memory_space<vmem>>, %arg2: memref<32x4xf32, #tpu.memory_space<vmem>>, %arg3: memref<32x32xf32, #tpu.memory_space<vmem>>, %arg4: memref<1x32xf32, #tpu.memory_space<vmem>>, %arg5: memref<32x32xf32, #tpu.memory_space<vmem>>, %arg6: memref<1x32xf32, #tpu.memory_space<vmem>>, %arg7: memref<1x1xf32, #tpu.memory_space<smem>>, %arg8: memref<128x1xf32, #tpu.memory_space<vmem>>) attributes {dimension_semantics = [#tpu.dimension_semantics<parallel>], iteration_bounds = array<i64: 2>, scalar_prefetch = 0 : i64, scratch_operands = 0 : i64, tpu.core_type = #tpu.core_type<tc>, window_params = [{transform_indices = @transform_0, window_bounds = array<i64: 128, 80>}, {pipeline_mode = #tpu.pipeline_mode<synchronous>, transform_indices = @transform_1, window_bounds = array<i64: 32, 4>}, {pipeline_mode = #tpu.pipeline_mode<synchronous>, transform_indices = @transform_2, window_bounds = array<i64: 32, 32>}, {pipeline_mode = #tpu.pipeline_mode<synchronous>, transform_indices = @transform_3, window_bounds = array<i64: 1, 32>}, {pipeline_mode = #tpu.pipeline_mode<synchronous>, transform_indices = @transform_4, window_bounds = array<i64: 32, 32>}, {pipeline_mode = #tpu.pipeline_mode<synchronous>, transform_indices = @transform_5, window_bounds = array<i64: 1, 32>}, {transform_indices = @transform_6, window_bounds = array<i64: 1, 1>}, {transform_indices = @transform_7, window_bounds = array<i64: 128, 1>}]} {
    %c0 = arith.constant 0 : index
    %c0_0 = arith.constant 0 : index
    %0 = vector.load %arg1[%c0, %c0_0] : memref<128x80xf32, #tpu.memory_space<vmem>>, vector<128x80xf32>
    %1 = vector.extract_strided_slice %0 {offsets = [0, 0], sizes = [128, 32], strides = [1, 1]} : vector<128x80xf32> to vector<128x32xf32>
    %2 = vector.extract_strided_slice %0 {offsets = [0, 32], sizes = [128, 32], strides = [1, 1]} : vector<128x80xf32> to vector<128x32xf32>
    %3 = vector.extract_strided_slice %0 {offsets = [0, 64], sizes = [128, 8], strides = [1, 1]} : vector<128x80xf32> to vector<128x8xf32>
    %4 = vector.extract_strided_slice %0 {offsets = [0, 72], sizes = [128, 8], strides = [1, 1]} : vector<128x80xf32> to vector<128x8xf32>
    %5 = arith.mulf %3, %4 : vector<128x8xf32>
    %cst = arith.constant dense<0.000000e+00> : vector<128xf32>
    %6 = vector.multi_reduction <add>, %5, %cst [1] : vector<128x8xf32> to vector<128xf32>
    %7 = vector.shape_cast %6 : vector<128xf32> to vector<128x1xf32>
    %8 = arith.mulf %1, %2 : vector<128x32xf32>
    %c0_1 = arith.constant 0 : index
    %c0_2 = arith.constant 0 : index
    %9 = vector.load %arg2[%c0_1, %c0_2] : memref<32x4xf32, #tpu.memory_space<vmem>>, vector<32x4xf32>
    %cst_3 = arith.constant dense<0.000000e+00> : vector<128x4xf32>
    %10 = tpu.matmul %8, %9, %cst_3 {dimension_numbers = #tpu.dot_dimension_numbers<[1], [0], [0], [1], [0, 0, 1, 1], [], []>} : vector<128x32xf32>, vector<32x4xf32>, vector<128x4xf32> -> vector<128x4xf32>
    %11 = arith.mulf %10, %10 : vector<128x4xf32>
    %cst_4 = arith.constant dense<0.000000e+00> : vector<128xf32>
    %12 = vector.multi_reduction <add>, %11, %cst_4 [1] : vector<128x4xf32> to vector<128xf32>
    %13 = vector.shape_cast %12 : vector<128xf32> to vector<128x1xf32>
    %14 = arith.mulf %8, %8 : vector<128x32xf32>
    %cst_5 = arith.constant dense<0.000000e+00> : vector<128xf32>
    %15 = vector.multi_reduction <add>, %14, %cst_5 [1] : vector<128x32xf32> to vector<128xf32>
    %16 = vector.shape_cast %15 : vector<128xf32> to vector<128x1xf32>
    %17 = arith.subf %13, %16 : vector<128x1xf32>
    %cst_6 = arith.constant 5.000000e-01 : f32
    %18 = vector.broadcast %cst_6 : f32 to vector<128x1xf32>
    %19 = arith.mulf %18, %17 : vector<128x1xf32>
    %c0_7 = arith.constant 0 : index
    %c0_8 = arith.constant 0 : index
    %20 = vector.load %arg3[%c0_7, %c0_8] : memref<32x32xf32, #tpu.memory_space<vmem>>, vector<32x32xf32>
    %cst_9 = arith.constant dense<0.000000e+00> : vector<128x32xf32>
    %21 = tpu.matmul %8, %20, %cst_9 {dimension_numbers = #tpu.dot_dimension_numbers<[1], [0], [0], [1], [0, 0, 1, 1], [], []>} : vector<128x32xf32>, vector<32x32xf32>, vector<128x32xf32> -> vector<128x32xf32>
    %c0_10 = arith.constant 0 : index
    %c0_11 = arith.constant 0 : index
    %22 = vector.load %arg4[%c0_10, %c0_11] : memref<1x32xf32, #tpu.memory_space<vmem>>, vector<1x32xf32>
    %23 = vector.broadcast %22 : vector<1x32xf32> to vector<128x32xf32>
    %24 = arith.addf %21, %23 : vector<128x32xf32>
    %cst_12 = arith.constant 0.000000e+00 : f32
    %25 = vector.broadcast %cst_12 : f32 to vector<128x32xf32>
    %26 = arith.maximumf %24, %25 : vector<128x32xf32>
    %c0_13 = arith.constant 0 : index
    %c0_14 = arith.constant 0 : index
    %27 = vector.load %arg5[%c0_13, %c0_14] : memref<32x32xf32, #tpu.memory_space<vmem>>, vector<32x32xf32>
    %cst_15 = arith.constant dense<0.000000e+00> : vector<128x32xf32>
    %28 = tpu.matmul %26, %27, %cst_15 {dimension_numbers = #tpu.dot_dimension_numbers<[1], [0], [0], [1], [0, 0, 1, 1], [], []>} : vector<128x32xf32>, vector<32x32xf32>, vector<128x32xf32> -> vector<128x32xf32>
    %c0_16 = arith.constant 0 : index
    %c0_17 = arith.constant 0 : index
    %29 = vector.load %arg6[%c0_16, %c0_17] : memref<1x32xf32, #tpu.memory_space<vmem>>, vector<1x32xf32>
    %30 = vector.broadcast %29 : vector<1x32xf32> to vector<128x32xf32>
    %31 = arith.addf %28, %30 : vector<128x32xf32>
    %cst_18 = arith.constant 0.000000e+00 : f32
    %32 = vector.broadcast %cst_18 : f32 to vector<128x32xf32>
    %33 = arith.maximumf %31, %32 : vector<128x32xf32>
    %cst_19 = arith.constant dense<0.000000e+00> : vector<128xf32>
    %34 = vector.multi_reduction <add>, %33, %cst_19 [1] : vector<128x32xf32> to vector<128xf32>
    %35 = vector.shape_cast %34 : vector<128xf32> to vector<128x1xf32>
    %36 = arith.addf %7, %19 : vector<128x1xf32>
    %37 = arith.addf %36, %35 : vector<128x1xf32>
    %c0_20 = arith.constant 0 : index
    %c0_21 = arith.constant 0 : index
    %38 = memref.load %arg7[%c0_20, %c0_21] : memref<1x1xf32, #tpu.memory_space<smem>>
    %39 = vector.broadcast %38 : f32 to vector<128x1xf32>
    %40 = arith.addf %37, %39 : vector<128x1xf32>
    %c0_22 = arith.constant 0 : index
    %c0_23 = arith.constant 0 : index
    %41 = vector.load %arg8[%c0_22, %c0_23] : memref<128x1xf32, #tpu.memory_space<vmem>>, vector<128x1xf32>
    tpu.vector_store %arg8[%c0_22, %c0_23], %40 {strides = array<i32>} : memref<128x1xf32, #tpu.memory_space<vmem>>, vector<128x1xf32>,
    return
  }
  func.func @transform_0(%arg0: i32) -> (i32, i32) {
    %c0_i32 = arith.constant 0 : i32
    %c0_i32_0 = arith.constant 0 : i32
    return %arg0, %c0_i32 : i32, i32
  }
  func.func @transform_1(%arg0: i32) -> (i32, i32) {
    %c0_i32 = arith.constant 0 : i32
    %c0_i32_0 = arith.constant 0 : i32
    %c0_i32_1 = arith.constant 0 : i32
    return %c0_i32, %c0_i32_0 : i32, i32
  }
  func.func @transform_2(%arg0: i32) -> (i32, i32) {
    %c0_i32 = arith.constant 0 : i32
    %c0_i32_0 = arith.constant 0 : i32
    %c0_i32_1 = arith.constant 0 : i32
    return %c0_i32, %c0_i32_0 : i32, i32
  }
  func.func @transform_3(%arg0: i32) -> (i32, i32) {
    %c0_i32 = arith.constant 0 : i32
    %c0_i32_0 = arith.constant 0 : i32
    %c0_i32_1 = arith.constant 0 : i32
    return %c0_i32, %c0_i32_0 : i32, i32
  }
  func.func @transform_4(%arg0: i32) -> (i32, i32) {
    %c0_i32 = arith.constant 0 : i32
    %c0_i32_0 = arith.constant 0 : i32
    %c0_i32_1 = arith.constant 0 : i32
    return %c0_i32, %c0_i32_0 : i32, i32
  }
  func.func @transform_5(%arg0: i32) -> (i32, i32) {
    %c0_i32 = arith.constant 0 : i32
    %c0_i32_0 = arith.constant 0 : i32
    %c0_i32_1 = arith.constant 0 : i32
    return %c0_i32, %c0_i32_0 : i32, i32
  }
  func.func @transform_6(%arg0: i32) -> (i32, i32) {
    %c0_i32 = arith.constant 0 : i32
    %c0_i32_0 = arith.constant 0 : i32
    %c0_i32_1 = arith.constant 0 : i32
    return %c0_i32, %c0_i32_0 : i32, i32
  }
  func.func @transform_7(%arg0: i32) -> (i32, i32) {
    %c0_i32 = arith.constant 0 : i32
    %c0_i32_0 = arith.constant 0 : i32
    return %arg0, %c0_i32 : i32, i32
  }
}

</mosaic_0001>

<bundles_post_ra>
// kernel: tpu_custom_call.1
= control target key start
LH: loop header
LB: loop body
LE: loop exit
PB: predicated region body
PF: predicated region fallthrough
CT: control target
= control target key end

     0   :  { %s1788_s26 = smov 0   ;;  %s2421_s0 = inlined_call_operand.vmem [shape: f32[256,80], index: 0, kind: input, shape index: {}]   ;;  %s2422_s1 = inlined_call_operand.vmem [shape: f32[32,4], index: 1, kind: input, shape index: {}]   ;;  %s2423_s2 = inlined_call_operand.vmem [shape: f32[32,32], index: 2, kind: input, shape index: {}]   ;;  %s2424_s3 = inlined_call_operand.vmem [shape: f32[1,32], index: 3, kind: input, shape index: {}]   ;;  %s2425_s4 = inlined_call_operand.vmem [shape: f32[32,32], index: 4, kind: input, shape index: {}]   ;;  %s2426_s5 = inlined_call_operand.vmem [shape: f32[1,32], index: 5, kind: input, shape index: {}]   ;;  %s2427_s6 = inlined_call_operand.<no memory space> [shape: f32[1,1], index: 6, kind: input, shape index: {}]   ;;  %s2428_s7 = inlined_call_operand.vmem [shape: f32[256,1], index: 7, kind: output, shape index: {}]  }
   0x1   :  { %12 = sst [smem:[#allocation2]] %s2427_s6 }
   0x2 LB: > { %s1478_s27 = sadd.s32 4294967295, %s1740_s26   ;;  %p1482_p0 = scmp.ge.s32.totalorder %s1740_s26, 1  ;;  %s1740_s26 = sphi %s1788_s26, %s18_s26  }
   0x3   : > { %p239_p1 = scmp.lt.s32.totalorder %s1740_s26, 3 }
   0x5   : > { %p240_p2 = pnand %p1482_p0, %p239_p1 }
   0x6   : > { %s1483_s28 = sshll.u32 (!%p240_p2), %s1478_s27, 4  ;;  %v556_v0 = vld [vmem:[%s2422_s1] sm:$0xff] (!%p240_p2)  ;;  %v557_v1 = vld [vmem:[%s2422_s1 + $0x8] sm:$0xff] (!%p240_p2)  ;;  %v558_v2 = vld [vmem:[%s2422_s1 + $0x10] sm:$0xff] (!%p240_p2)  ;;  %s1742_s21 = smov (!%p240_p2), 96   ;;  %vm560_vm0 = vcmask (!%p240_p2), 261120  }
   0x7   : > { %243 = sbr.rel (%p240_p2) target bundleno = 766 (0x2fe), region = 48  ;;  %p272_p3 = scmp.lt.s32.totalorder (!%p240_p2), %s1483_s28, 31  ;;  %v1695_v3 = vpack.c.bf16 (!%p240_p2), %v557_v1, %v556_v0  ;;  %v559_v4 = vld [vmem:[%s2422_s1 + $0x18] sm:$0xff] (!%p240_p2)  ;;  %v915_v6 = vld [vmem:[%s2423_s2] sm:$0xff] (!%p240_p2)  ;;  %v916_v7 = vld [vmem:[%s2423_s2 + $0x8] sm:$0xff] (!%p240_p2)  ;;  %vm443_vm1 = vcmask (!%p240_p2), 64512  }
   0x8   : > { %v1699_v5 = vpack.c.bf16 (!%p240_p2), %v559_v4, %v558_v2  ;;  %v1824_v8 = vpack.c.bf16 (!%p240_p2), %v916_v7, %v915_v6  ;;  %s1743_s22 = smov (!%p240_p2), 120   ;;  %v917_v28 = vld [vmem:[%s2423_s2 + $0x10] sm:$0xff] (!%p240_p2)  ;;  %v918_v29 = vld [vmem:[%s2423_s2 + $0x18] sm:$0xff] (!%p240_p2)  ;;  %s1744_s29 = smov (!%p240_p2), 64   ;;  %vm770_vm2 = vcmask (!%p240_p2), 31744   ;;  %vm1405_vm3 = vcmask (!%p240_p2), 7168  }
   0x9   : > { %1719 = vmatprep.subr.bf16.mxu1 (!%p240_p2), %v1695_v3  ;;  %1696 = vmatprep.subr.bf16.mxu0 (!%p240_p2), %v1695_v3  ;;  %v1707_v34 = vpack.c.bf16 (!%p240_p2), %v918_v29, %v917_v28  ;;  %s1387_s19 = sld [smem:[#allocation2]] (!%p240_p2) }
   0xa   : > { %1721 = vmatpush3.bf16.msra.mxu1 (!%p240_p2), %v1695_v3  ;;  %1698 = vmatpush3.bf16.msra.mxu0 (!%p240_p2), %v1695_v3 }
   0xb   : > { %1720 = vmatprep.subr.bf16.mxu1 (!%p240_p2), %v1699_v5  ;;  %1700 = vmatprep.subr.bf16.mxu0 (!%p240_p2), %v1699_v5 }
   0xe   : > { %s2430_s28 = smov (!%p272_p3, %s1483_s28), 31  ;;  %1722 = vmatpush3.bf16.msra.mxu1 %v1699_v5  ;;  %1702 = vmatpush3.bf16.msra.mxu0 %v1699_v5 }
   0xf   : > { %s1484_s17 = sshll.u32 %s2430_s28, 3  ;;  %1704 = vmatprep.subr.bf16.mxu1 %v1824_v8 }
  0x10   : > { %s1822_s20 = scalar_lea.vmem %s2421_s0, %s1484_s17 }
  0x11   : > { %v1827_v9 = vld [vmem:[%s1822_s20 + $0x50] sm:$0xff]  ;;  %v1830_v10 = vld [vmem:[%s1822_s20 + $0x40] sm:$0xff]  ;;  %v1837_v11 = vld [vmem:[%s1822_s20 + $0x58] sm:$0xff] }
  0x12   : > { %512 = vrot.lane.b32.xlu1 %v1827_v9, %s1742_s21  ;;  %508 = vrot.lane.b32.xlu0 %v1830_v10, %s1742_s21  ;;  %v1840_v12 = vld [vmem:[%s1822_s20 + $0x48] sm:$0xff]  ;;  %v1851_v14 = vld [vmem:[%s1822_s20 + $0x60] sm:$0xff] }
  0x13   : > { %v1848_v13 = vld [vmem:[%s1822_s20 + $0x68] sm:$0xff]  ;;  %v1858_v15 = vld [vmem:[%s1822_s20 + $0x78] sm:$0xff]  ;;  %v1861_v16 = vld [vmem:[%s1822_s20 + $0x70] sm:$0xff] }
  0x14   : > { %v1868_v17 = vld [vmem:[%s1822_s20 + $0x8] sm:$0xff]  ;;  %v1871_v18 = vld [vmem:[%s1822_s20] sm:$0xff]  ;;  %v1878_v19 = vld [vmem:[%s1822_s20 + $0x18] sm:$0xff] }
  0x15   : > { %v1881_v20 = vld [vmem:[%s1822_s20 + $0x10] sm:$0xff]  ;;  %v1888_v21 = vld [vmem:[%s1822_s20 + $0x28] sm:$0xff]  ;;  %v1891_v22 = vld [vmem:[%s1822_s20 + $0x20] sm:$0xff] }
  0x16   : > { %514 = vrot.lane.b32.xlu1 %v1837_v11, %s1742_s21  ;;  %510 = vrot.lane.b32.xlu0 %v1840_v12, %s1742_s21  ;;  %v1898_v23 = vld [vmem:[%s1822_s20 + $0x38] sm:$0xff]  ;;  %v1901_v24 = vld [vmem:[%s1822_s20 + $0x30] sm:$0xff] }
  0x1a   : > { %518 = vrot.lane.b32.xlu1 %v1848_v13, %s1742_s21  ;;  %516 = vrot.lane.b32.xlu0 %v1851_v14, %s1742_s21 }
  0x1e   : > { %522 = vrot.lane.b32.xlu1 %v1858_v15, %s1742_s21  ;;  %520 = vrot.lane.b32.xlu0 %v1861_v16, %s1742_s21 }
  0x22   : > { %494 = vrot.lane.b32.xlu1 %v1868_v17, %s1742_s21  ;;  %492 = vrot.lane.b32.xlu0 %v1871_v18, %s1742_s21 }
  0x26   : > { %498 = vrot.lane.b32.xlu1 %v1878_v19, %s1742_s21  ;;  %496 = vrot.lane.b32.xlu0 %v1881_v20, %s1742_s21 }
  0x2a   : > { %502 = vrot.lane.b32.xlu1 %v1888_v21, %s1742_s21  ;;  %500 = vrot.lane.b32.xlu0 %v1891_v22, %s1742_s21 }
  0x2e   : > { %506 = vrot.lane.b32.xlu1 %v1898_v23, %s1742_s21  ;;  %504 = vrot.lane.b32.xlu0 %v1901_v24, %s1742_s21 }
  0x32   : > { %317 = vrot.lane.b32.xlu1 %v1868_v17, %s1743_s22  ;;  %315 = vrot.lane.b32.xlu0 %v1871_v18, %s1743_s22 }
  0x36   : > { %321 = vrot.lane.b32.xlu1 %v1878_v19, %s1743_s22  ;;  %319 = vrot.lane.b32.xlu0 %v1881_v20, %s1743_s22 }
  0x3a   : > { %325 = vrot.lane.b32.xlu1 %v1888_v21, %s1743_s22  ;;  %323 = vrot.lane.b32.xlu0 %v1891_v22, %s1743_s22 }
  0x3e   : > { %329 = vrot.lane.b32.xlu1 %v1898_v23, %s1743_s22  ;;  %327 = vrot.lane.b32.xlu0 %v1901_v24, %s1743_s22 }
  0x42   : > { %333 = vrot.lane.b32.xlu1 %v1840_v12, %s1743_s22  ;;  %331 = vrot.lane.b32.xlu0 %v1830_v10, %s1743_s22 }
  0x46   : > { %337 = vrot.lane.b32.xlu1 %v1837_v11, %s1743_s22  ;;  %335 = vrot.lane.b32.xlu0 %v1827_v9, %s1743_s22 }
  0x4a   : > { %341 = vrot.lane.b32.xlu1 %v1848_v13, %s1743_s22  ;;  %339 = vrot.lane.b32.xlu0 %v1851_v14, %s1743_s22 }
  0x4e   : > { %345 = vrot.lane.b32.xlu1 %v1858_v15, %s1743_s22  ;;  %343 = vrot.lane.b32.xlu0 %v1861_v16, %s1743_s22  ;;  %s2339_s22 = scalar_lea.vmem %s2428_s7, %s1484_s17 }
  0x84   : > { %v513_v25 = vpop.permute.xlu1 %512  ;;  %v509_v26 = vpop.permute.xlu0 %508 }
  0x85   : > { %v1924_v27 = vmul.f32 %v509_v26, %v1830_v10  ;;  %v1935_v30 = vmul.f32 %v513_v25, %v1827_v9 }
  0x87   : > { %1619 = vmatprep.mubr.msk.f32.mxu1 %vm560_vm0, %v1924_v27 }
  0x88   : > { %v515_v31 = vpop.permute.xlu1 %514  ;;  %v511_v32 = vpop.permute.xlu0 %510 }
  0x89   : > { %v1938_v33 = vmul.f32 %v511_v32, %v1840_v12  ;;  %v1941_v35 = vmul.f32 %v515_v31, %v1837_v11 }
  0x8b   : > { %1620 = vmatmul.mubr.msk.f32.vlgmr.msra.gmra.mrb[0].mxu1 %vm560_vm0, %v1938_v33 }
  0x8c   : > { %1706 = vmatpush3.bf16.msra.mxu1 %v1824_v8  ;;  %v519_v36 = vpop.permute.xlu1 %518  ;;  %1622 = vmatprep.mubr.msk.f32.mxu1 %vm560_vm0, %v1935_v30  ;;  %v517_v37 = vpop.permute.xlu0 %516 }
  0x8d   : > { %v1949_v38 = vmul.f32 %v517_v37, %v1851_v14  ;;  %1708 = vmatprep.subr.bf16.mxu1 %v1707_v34  ;;  %v1952_v39 = vmul.f32 %v519_v36, %v1848_v13 }
  0x8f   : > { %1623 = vmatmul.mubr.msk.f32.gmra.mrb[2].mxu1 %vm560_vm0, %v1941_v35 }
  0x90   : > { %v523_v40 = vpop.permute.xlu1 %522  ;;  %v521_v41 = vpop.permute.xlu0 %520  ;;  %1625 = vmatprep.mubr.msk.f32.mxu1 %vm560_vm0, %v1949_v38  ;;  %1710 = vmatpush3.bf16.msra.mxu1 %v1707_v34 }
  0x91   : > { %v1959_v42 = vmul.f32 %v521_v41, %v1861_v16  ;;  %v1962_v43 = vmul.f32 %v523_v40, %v1858_v15 }
  0x93   : > { %1626 = vmatmul.mubr.msk.f32.gmra.mrb[4].mxu1 %vm560_vm0, %v1952_v39 }
  0x94   : > { %v495_v44 = vpop.permute.xlu1 %494  ;;  %v493_v45 = vpop.permute.xlu0 %492  ;;  %1628 = vmatprep.mubr.msk.f32.mxu1 %vm560_vm0, %v1959_v42 }
  0x95   : > { %v1969_v46 = vmul.f32 %v495_v44, %v1868_v17  ;;  %v1972_v47 = vmul.f32 %v493_v45, %v1871_v18 }
  0x97   : > { %1607 = vmatprep.mubr.msk.f32.mxu0 %vm560_vm0, %v1972_v47  ;;  %1629 = vmatmul.mubr.msk.f32.gmra.mrb[6].mxu1 %vm560_vm0, %v1962_v43  ;;  %v820_v36 = vmul.f32 %v1969_v46, %v1969_v46  ;;  %v819_v37 = vmul.f32 %v1972_v47, %v1972_v47 }
  0x98   : > { %v499_v48 = vpop.permute.xlu1 %498  ;;  %1608 = vmatmul.mubr.msk.f32.vlgmr.msra.gmra.mrb[0].mxu0 %vm560_vm0, %v1969_v46  ;;  %v497_v49 = vpop.permute.xlu0 %496  ;;  %1639 = vmatprep.mubr.msk.f32.mxu1 %vm560_vm0, %v1972_v47 }
  0x99   : > { %v1983_v50 = vmul.f32 %v499_v48, %v1878_v19  ;;  %v1986_v51 = vmul.f32 %v497_v49, %v1881_v20  ;;  %v835_v44 = vsel %vm560_vm0, %v819_v37, 0.0 }
  0x9b   : > { %1640 = vmatmul.mubr.msk.f32.vlgmr.msra.gmra.mrb[8].mxu1 %vm560_vm0, %v1969_v46  ;;  %1610 = vmatprep.mubr.msk.f32.mxu0 %vm560_vm0, %v1986_v51  ;;  %v821_v46 = vmul.f32 %v1986_v51, %v1986_v51 }
  0x9c   : > { %v503_v52 = vpop.permute.xlu1 %502  ;;  %v501_v53 = vpop.permute.xlu0 %500  ;;  %1611 = vmatmul.mubr.msk.f32.gmra.mrb[2].mxu0 %vm560_vm0, %v1983_v50  ;;  %1642 = vmatprep.mubr.msk.f32.mxu1 %vm560_vm0, %v1986_v51  ;;  %v1089_v51 = vld [vmem:[%s2425_s4 + $0x10] sm:$0xff] }
  0x9d   : > { %v1997_v54 = vmul.f32 %v503_v52, %v1888_v21  ;;  %v2000_v55 = vmul.f32 %v501_v53, %v1891_v22  ;;  %v841_v48 = vsel %vm560_vm0, %v821_v46, 0.0  ;;  %v828_v52 = vmul.f32 %v1938_v33, %v1938_v33  ;;  %v1090_v53 = vld [vmem:[%s2425_s4 + $0x18] sm:$0xff] }
  0x9f   : > { %1643 = vmatmul.mubr.msk.f32.gmra.mrb[10].mxu1 %vm560_vm0, %v1983_v50  ;;  %1613 = vmatprep.mubr.msk.f32.mxu0 %vm560_vm0, %v2000_v55  ;;  %v824_v45 = vmul.f32 %v1997_v54, %v1997_v54 }
  0xa0   : > { %v507_v56 = vpop.permute.xlu1 %506  ;;  %v505_v57 = vpop.permute.xlu0 %504  ;;  %1614 = vmatmul.mubr.msk.f32.gmra.mrb[4].mxu0 %vm560_vm0, %v1997_v54  ;;  %1645 = vmatprep.mubr.msk.f32.mxu1 %vm560_vm0, %v2000_v55 }
  0xa1   : > { %v2011_v58 = vmul.f32 %v507_v56, %v1898_v23  ;;  %v2014_v59 = vmul.f32 %v505_v57, %v1901_v24  ;;  %v850_v47 = vsel %vm560_vm0, %v824_v45, 0.0  ;;  %v1715_v57 = vpack.c.bf16 %v1090_v53, %v1089_v51  ;;  %v2161_v53 = vld [vmem:[%s2424_s3] ss:$0 sm:$0xff] }
  0xa3   : > { %1646 = vmatmul.mubr.msk.f32.gmra.mrb[12].mxu1 %vm560_vm0, %v1997_v54  ;;  %1616 = vmatprep.mubr.msk.f32.mxu0 %vm560_vm0, %v2014_v59  ;;  %v826_v49 = vmul.f32 %v2011_v58, %v2011_v58 }
  0xa4   : > { %v318_v60 = vpop.permute.xlu1 %317  ;;  %v316_v61 = vpop.permute.xlu0 %315  ;;  %1617 = vmatmul.mubr.msk.f32.gmra.mrb[6].mxu0 %vm560_vm0, %v2011_v58  ;;  %1648 = vmatprep.mubr.msk.f32.mxu1 %vm560_vm0, %v2014_v59 }
  0xa5   : > { %v364_v62 = vmul.f32 %v318_v60, %v1868_v17  ;;  %v363_v63 = vmul.f32 %v316_v61, %v1871_v18  ;;  %v856_v54 = vsel %vm560_vm0, %v826_v49, 0.0  ;;  %v830_v60 = vmul.f32 %v1941_v35, %v1941_v35 }
  0xa6   : > { %v827_v61 = vmul.f32 %v1924_v27, %v1924_v27 }
  0xa7   : > { %397 = vrot.lane.b32.xlu1 %v364_v62, %s1744_s29  ;;  %1649 = vmatmul.mubr.msk.f32.gmra.mrb[14].mxu1 %vm560_vm0, %v2011_v58  ;;  %v868_v62 = vsel %vm560_vm0, %v830_v60, 0.0 }
  0xa8   : > { %395 = vrot.lane.b32.xlu0 %v363_v63, %s1744_s29  ;;  %v322_v0 = vpop.permute.xlu1 %321  ;;  %1651 = vmatprep.mubr.msk.f32.mxu1 %vm560_vm0, %v1924_v27  ;;  %v320_v1 = vpop.permute.xlu0 %319  ;;  %v832_v63 = vmul.f32 %v1952_v39, %v1952_v39  ;;  %v834_v27 = vmul.f32 %v1962_v43, %v1962_v43 }
  0xa9   : > { %v366_v2 = vmul.f32 %v322_v0, %v1878_v19  ;;  %v365_v3 = vmul.f32 %v320_v1, %v1881_v20  ;;  %v829_v0 = vmul.f32 %v1935_v30, %v1935_v30 }
  0xaa   : > { %v874_v1 = vsel %vm560_vm0, %v832_v63, 0.0 }
  0xab   : > { %401 = vrot.lane.b32.xlu1 %v366_v2, %s1744_s29  ;;  %1652 = vmatmul.mubr.msk.f32.gmra.mrb[16].mxu1 %vm560_vm0, %v1938_v33  ;;  %v862_v33 = vsel %vm560_vm0, %v828_v52, 0.0  ;;  %v831_v2 = vmul.f32 %v1949_v38, %v1949_v38 }
  0xac   : > { %399 = vrot.lane.b32.xlu0 %v365_v3, %s1744_s29  ;;  %v326_v4 = vpop.permute.xlu1 %325  ;;  %1654 = vmatprep.mubr.msk.f32.mxu1 %vm560_vm0, %v1935_v30  ;;  %v324_v5 = vpop.permute.xlu0 %323  ;;  %v880_v3 = vsel %vm560_vm0, %v834_v27, 0.0  ;;  %v833_v30 = vmul.f32 %v1959_v42, %v1959_v42 }
  0xad   : > { %v368_v6 = vmul.f32 %v326_v4, %v1888_v21  ;;  %v367_v7 = vmul.f32 %v324_v5, %v1891_v22 }
  0xae   : > { %v877_v4 = vsel %vm560_vm0, %v833_v30, 0.0 }
  0xaf   : > { %405 = vrot.lane.b32.xlu1 %v368_v6, %s1744_s29  ;;  %1655 = vmatmul.mubr.msk.f32.gmra.mrb[18].mxu1 %vm560_vm0, %v1941_v35  ;;  %v865_v35 = vsel %vm560_vm0, %v829_v0, 0.0 }
  0xb0   : > { %403 = vrot.lane.b32.xlu0 %v367_v7, %s1744_s29  ;;  %v330_v8 = vpop.permute.xlu1 %329  ;;  %1657 = vmatprep.mubr.msk.f32.mxu1 %vm560_vm0, %v1949_v38  ;;  %v328_v17 = vpop.permute.xlu0 %327 }
  0xb1   : > { %v370_v18 = vmul.f32 %v330_v8, %v1898_v23  ;;  %v369_v19 = vmul.f32 %v328_v17, %v1901_v24 }
  0xb3   : > { %409 = vrot.lane.b32.xlu1 %v370_v18, %s1744_s29  ;;  %1658 = vmatmul.mubr.msk.f32.gmra.mrb[20].mxu1 %vm560_vm0, %v1952_v39  ;;  %v871_v39 = vsel %vm560_vm0, %v831_v2, 0.0 }
  0xb4   : > { %407 = vrot.lane.b32.xlu0 %v369_v19, %s1744_s29  ;;  %v334_v20 = vpop.permute.xlu1 %333  ;;  %1660 = vmatprep.mubr.msk.f32.mxu1 %vm560_vm0, %v1959_v42  ;;  %v332_v21 = vpop.permute.xlu0 %331 }
  0xb5   : > { %v372_v22 = vmul.f32 %v334_v20, %v1840_v12  ;;  %v371_v25 = vmul.f32 %v332_v21, %v1830_v10 }
  0xb7   : > { %413 = vrot.lane.b32.xlu1 %v372_v22, %s1744_s29  ;;  %1661 = vmatmul.mubr.msk.f32.gmra.mrb[22].mxu1 %vm560_vm0, %v1962_v43 }
  0xb8   : > { %411 = vrot.lane.b32.xlu0 %v371_v25, %s1744_s29  ;;  %v338_v23 = vpop.permute.xlu1 %337  ;;  %v336_v24 = vpop.permute.xlu0 %335 }
  0xb9   : > { %v374_v26 = vmul.f32 %v338_v23, %v1837_v11  ;;  %v373_v28 = vmul.f32 %v336_v24, %v1827_v9 }
  0xbb   : > { %417 = vrot.lane.b32.xlu1 %v374_v26, %s1744_s29 }
  0xbc   : > { %415 = vrot.lane.b32.xlu0 %v373_v28, %s1744_s29  ;;  %v342_v12 = vpop.permute.xlu1 %341  ;;  %v340_v29 = vpop.permute.xlu0 %339 }
  0xbd   : > { %v376_v10 = vmul.f32 %v342_v12, %v1848_v13  ;;  %v375_v31 = vmul.f32 %v340_v29, %v1851_v14  ;;  %v838_v13 = vsel %vm560_vm0, %v820_v36, 0.0  ;;  %v822_v14 = vmul.f32 %v1983_v50, %v1983_v50 }
  0xbe   : > { %v823_v50 = vmul.f32 %v2000_v55, %v2000_v55  ;;  %v825_v55 = vmul.f32 %v2014_v59, %v2014_v59  ;;  %v859_v59 = vsel %vm560_vm0, %v827_v61, 0.0 }
  0xbf   : > { %421 = vrot.lane.b32.xlu1 %v376_v10, %s1744_s29  ;;  %v844_v41 = vsel %vm560_vm0, %v822_v14, 0.0 }
  0xc0   : > { %419 = vrot.lane.b32.xlu0 %v375_v31, %s1744_s29  ;;  %v346_v32 = vpop.permute.xlu1 %345  ;;  %v344_v34 = vpop.permute.xlu0 %343  ;;  %v847_v56 = vsel %vm560_vm0, %v823_v50, 0.0  ;;  %v853_v58 = vsel %vm560_vm0, %v825_v55, 0.0 }
  0xc1   : > { %v378_v11 = vmul.f32 %v346_v32, %v1858_v15  ;;  %v377_v9 = vmul.f32 %v344_v34, %v1861_v16  ;;  %v1087_v15 = vld [vmem:[%s2425_s4] sm:$0xff]  ;;  %v1088_v16 = vld [vmem:[%s2425_s4 + $0x8] sm:$0xff] }
  0xc2   : > { %v1711_v40 = vpack.c.bf16 %v1088_v16, %v1087_v15 }
  0xc3   : > { %425 = vrot.lane.b32.xlu1 %v378_v11, %s1744_s29 }
  0xc4   : > { %423 = vrot.lane.b32.xlu0 %v377_v9, %s1744_s29  ;;  %1712 = vmatprep.subr.bf16.mxu0 %v1711_v40 }
  0xc5   : > { %1714 = vmatpush3.bf16.msra.mxu0 %v1711_v40 }
  0xc6   : > { %1716 = vmatprep.subr.bf16.mxu0 %v1715_v57 }
  0xc9   : > { %1718 = vmatpush3.bf16.msra.mxu0 %v1715_v57 }
  0xe3   : > { %839 = vadd.xlane.f32.xlu0 %v838_v13 }
  0xe7   : > { %845 = vadd.xlane.f32.xlu0 %v844_v41  ;;  %836 = vadd.xlane.f32.xlu1 %v835_v44 }
  0xeb   : > { %851 = vadd.xlane.f32.xlu0 %v850_v47  ;;  %842 = vadd.xlane.f32.xlu1 %v841_v48 }
  0xef   : > { %857 = vadd.xlane.f32.xlu0 %v856_v54  ;;  %848 = vadd.xlane.f32.xlu1 %v847_v56 }
  0xf3   : > { %863 = vadd.xlane.f32.xlu0 %v862_v33  ;;  %854 = vadd.xlane.f32.xlu1 %v853_v58 }
  0xf7   : > { %869 = vadd.xlane.f32.xlu0 %v868_v62  ;;  %860 = vadd.xlane.f32.xlu1 %v859_v59 }
  0xfb   : > { %875 = vadd.xlane.f32.xlu0 %v874_v1  ;;  %866 = vadd.xlane.f32.xlu1 %v865_v35 }
  0xff   : > { %881 = vadd.xlane.f32.xlu0 %v880_v3  ;;  %872 = vadd.xlane.f32.xlu1 %v871_v39 }
 0x103   : > { %878 = vadd.xlane.f32.xlu1 %v877_v4 }
 0x119   : > { %v398_v5 = vpop.permute.xlu1 %397 }
 0x11a   : > { %v396_v43 = vpop.permute.xlu0 %395  ;;  %v447_v6 = vsel %vm443_vm1, %v398_v5, 0.0 }
 0x11b   : > { %v444_v38 = vsel %vm443_vm1, %v396_v43, 0.0  ;;  %448 = vadd.xlane.f32.xlu1 %v447_v6 }
 0x11c   : > { %445 = vadd.xlane.f32.xlu0 %v444_v38 }
 0x11d   : > { %v402_v7 = vpop.permute.xlu1 %401 }
 0x11e   : > { %v400_v8 = vpop.permute.xlu0 %399  ;;  %v453_v42 = vsel %vm443_vm1, %v402_v7, 0.0 }
 0x11f   : > { %v450_v17 = vsel %vm443_vm1, %v400_v8, 0.0 }
 0x120   : > { %451 = vadd.xlane.f32.xlu0 %v450_v17 }
 0x121   : > { %v406_v18 = vpop.permute.xlu1 %405 }
 0x122   : > { %v404_v19 = vpop.permute.xlu0 %403  ;;  %v459_v21 = vsel %vm443_vm1, %v406_v18, 0.0 }
 0x123   : > { %v456_v20 = vsel %vm443_vm1, %v404_v19, 0.0 }
 0x124   : > { %454 = vadd.xlane.f32.xlu0 %v453_v42  ;;  %457 = vadd.xlane.f32.xlu1 %v456_v20 }
 0x125   : > { %v410_v22 = vpop.permute.xlu1 %409 }
 0x126   : > { %v408_v25 = vpop.permute.xlu0 %407  ;;  %v465_v24 = vsel %vm443_vm1, %v410_v22, 0.0 }
 0x127   : > { %v462_v23 = vsel %vm443_vm1, %v408_v25, 0.0 }
 0x128   : > { %460 = vadd.xlane.f32.xlu0 %v459_v21  ;;  %463 = vadd.xlane.f32.xlu1 %v462_v23 }
 0x129   : > { %v414_v26 = vpop.permute.xlu1 %413 }
 0x12a   : > { %v412_v28 = vpop.permute.xlu0 %411  ;;  %v471_v29 = vsel %vm443_vm1, %v414_v26, 0.0 }
 0x12b   : > { %v468_v12 = vsel %vm443_vm1, %v412_v28, 0.0 }
 0x12c   : > { %466 = vadd.xlane.f32.xlu0 %v465_v24  ;;  %469 = vadd.xlane.f32.xlu1 %v468_v12 }
 0x12d   : > { %v418_v10 = vpop.permute.xlu1 %417 }
 0x12e   : > { %v416_v31 = vpop.permute.xlu0 %415  ;;  %v477_v34 = vsel %vm443_vm1, %v418_v10, 0.0 }
 0x12f   : > { %v474_v32 = vsel %vm443_vm1, %v416_v31, 0.0 }
 0x130   : > { %472 = vadd.xlane.f32.xlu0 %v471_v29  ;;  %475 = vadd.xlane.f32.xlu1 %v474_v32 }
 0x131   : > { %v422_v11 = vpop.permute.xlu1 %421 }
 0x132   : > { %v420_v9 = vpop.permute.xlu0 %419  ;;  %v483_v13 = vsel %vm443_vm1, %v422_v11, 0.0 }
 0x133   : > { %v480_v36 = vsel %vm443_vm1, %v420_v9, 0.0 }
 0x134   : > { %478 = vadd.xlane.f32.xlu0 %v477_v34  ;;  %481 = vadd.xlane.f32.xlu1 %v480_v36 }
 0x135   : > { %v426_v14 = vpop.permute.xlu1 %425 }
 0x136   : > { %v424_v37 = vpop.permute.xlu0 %423  ;;  %v489_v16 = vsel %vm443_vm1, %v426_v14, 0.0 }
 0x137   : > { %v486_v15 = vsel %vm443_vm1, %v424_v37, 0.0 }
 0x138   : > { %484 = vadd.xlane.f32.xlu0 %v483_v13  ;;  %487 = vadd.xlane.f32.xlu1 %v486_v15 }
 0x13c   : > { %490 = vadd.xlane.f32.xlu0 %v489_v16 }
 0x15e   : > { %v1621_v40 = vpop.f32.mrb[0].mxu1 }
 0x15f   : > { %v715_v41 = vpop.f32.mrb[1].mxu1  ;;  %v763_v56 = vmul.f32 %v1621_v40, %v1621_v40 }
 0x160   : > { %v762_v33 = vmul.f32 %v715_v41, %v715_v41 }
 0x161   : > { %v798_v27 = vsel %vm770_vm2, %v763_v56, 0.0 }
 0x162   : > { %v1624_v44 = vpop.f32.mrb[2].mxu1  ;;  %v795_v4 = vsel %vm770_vm2, %v762_v33, 0.0 }
 0x163   : > { %v725_v45 = vpop.f32.mrb[3].mxu1  ;;  %v765_v7 = vmul.f32 %v1624_v44, %v1624_v44 }
 0x164   : > { %v764_v42 = vmul.f32 %v725_v45, %v725_v45 }
 0x165   : > { %v804_v12 = vsel %vm770_vm2, %v765_v7, 0.0 }
 0x166   : > { %v2150_v46 = vpop.f32.mrb[4].mxu1  ;;  %v801_v34 = vsel %vm770_vm2, %v764_v42, 0.0 }
 0x167   : > { %v2152_v47 = vpop.f32.mrb[5].mxu1  ;;  %v767_v9 = vmul.f32 %v2150_v46, %v2150_v46 }
 0x168   : > { %v766_v37 = vmul.f32 %v2152_v47, %v2152_v47 }
 0x16a   : > { %v2154_v48 = vpop.f32.mrb[6].mxu1 }
 0x16b   : > { %v1609_v49 = vpop.f32.mrb[0].mxu0  ;;  %v2156_v50 = vpop.f32.mrb[7].mxu1  ;;  %v769_v33 = vmul.f32 %v2154_v48, %v2154_v48 }
 0x16c   : > { %v755_v52 = vmul.f32 %v1609_v49, %v1609_v49  ;;  %v675_v51 = vpop.f32.mrb[1].mxu0 }
 0x16d   : > { %v754_v54 = vmul.f32 %v675_v51, %v675_v51 }
 0x16e   : > { %v1641_v55 = vpop.f32.mrb[8].mxu1  ;;  %v774_v57 = vsel %vm770_vm2, %v755_v52, 0.0  ;;  %v810_v52 = vsel %vm770_vm2, %v767_v9, 0.0 }
 0x16f   : > { %v998_v58 = vadd.f32 %v1641_v55, %v2161_v53  ;;  %v992_v60 = vpop.f32.mrb[9].mxu1  ;;  %775 = vadd.xlane.f32.xlu0 %v774_v57  ;;  %v771_v61 = vsel %vm770_vm2, %v754_v54, 0.0  ;;  %v1612_v62 = vpop.f32.mrb[2].mxu0  ;;  %v807_v55 = vsel %vm770_vm2, %v766_v37, 0.0 }
 0x170   : > { %v993_v59 = vadd.f32 %v2161_v53, %v992_v60  ;;  %772 = vadd.xlane.f32.xlu1 %v771_v61  ;;  %v757_v63 = vmul.f32 %v1612_v62, %v1612_v62  ;;  %v685_v0 = vpop.f32.mrb[3].mxu0  ;;  %v768_v62 = vmul.f32 %v2156_v50, %v2156_v50  ;;  %v2224_v7 = vpop.xlane.xlu0 %839 }
 0x171   : > { %v1072_v2 = vmax.f32 %v998_v58, 0.0  ;;  %v756_v3 = vmul.f32 %v685_v0, %v685_v0 }
 0x172   : > { %v1071_v1 = vmax.f32 %v993_v59, 0.0  ;;  %v1644_v35 = vpop.f32.mrb[10].mxu1  ;;  %v780_v6 = vsel %vm770_vm2, %v757_v63, 0.0 }
 0x173   : > { %v1008_v39 = vadd.f32 %v1644_v35, %v2161_v53  ;;  %v1002_v30 = vpop.f32.mrb[11].mxu1  ;;  %799 = vadd.xlane.f32.xlu0 %v798_v27  ;;  %v1615_v5 = vpop.f32.mrb[4].mxu0  ;;  %v777_v21 = vsel %vm770_vm2, %v756_v3, 0.0 }
 0x174   : > { %v1003_v43 = vadd.f32 %v2161_v53, %v1002_v30  ;;  %1671 = vmatprep.mubr.msk.f32.mxu0 %vm560_vm0, %v1071_v1  ;;  %796 = vadd.xlane.f32.xlu1 %v795_v4  ;;  %v695_v38 = vpop.f32.mrb[5].mxu0  ;;  %v759_v24 = vmul.f32 %v1615_v5, %v1615_v5  ;;  %v813_v30 = vsel %vm770_vm2, %v768_v62, 0.0 }
 0x175   : > { %1672 = vmatmul.mubr.msk.f32.vlgmr.msra.gmra.mrb[8].mxu0 %vm560_vm0, %v1072_v2  ;;  %v1074_v18 = vmax.f32 %v1008_v39, 0.0  ;;  %v758_v29 = vmul.f32 %v695_v38, %v695_v38  ;;  %v816_v2 = vsel %vm770_vm2, %v769_v33, 0.0 }
 0x176   : > { %v1073_v8 = vmax.f32 %v1003_v43, 0.0  ;;  %v1647_v17 = vpop.f32.mrb[12].mxu1  ;;  %v786_v14 = vsel %vm770_vm2, %v759_v24, 0.0  ;;  %v2232_v24 = vpop.xlane.xlu0 %845 }
 0x177   : > { %v1018_v19 = vadd.f32 %v1647_v17, %v2161_v53  ;;  %v1012_v20 = vpop.f32.mrb[13].mxu1  ;;  %781 = vadd.xlane.f32.xlu0 %v780_v6  ;;  %v1618_v22 = vpop.f32.mrb[6].mxu0  ;;  %v783_v41 = vsel %vm770_vm2, %v758_v29, 0.0  ;;  %v2222_v6 = vld [vmem:[%s2426_s5] ss:$0 sm:$0xff] }
 0x178   : > { %v1013_v25 = vadd.f32 %v2161_v53, %v1012_v20  ;;  %1674 = vmatprep.mubr.msk.f32.mxu0 %vm560_vm0, %v1073_v8  ;;  %778 = vadd.xlane.f32.xlu1 %v777_v21  ;;  %v705_v23 = vpop.f32.mrb[7].mxu0  ;;  %v761_v45 = vmul.f32 %v1618_v22, %v1618_v22 }
 0x179   : > { %1675 = vmatmul.mubr.msk.f32.gmra.mrb[10].mxu0 %vm560_vm0, %v1074_v18  ;;  %v1076_v10 = vmax.f32 %v1018_v19, 0.0  ;;  %v760_v47 = vmul.f32 %v705_v23, %v705_v23 }
 0x17a   : > { %v1075_v26 = vmax.f32 %v1013_v25, 0.0  ;;  %v1650_v28 = vpop.f32.mrb[14].mxu1  ;;  %v792_v61 = vsel %vm770_vm2, %v761_v45, 0.0 }
 0x17b   : > { %v1028_v31 = vadd.f32 %v1650_v28, %v2161_v53  ;;  %v1022_v32 = vpop.f32.mrb[15].mxu1  ;;  %805 = vadd.xlane.f32.xlu0 %v804_v12  ;;  %v789_v1 = vsel %vm770_vm2, %v760_v47, 0.0 }
 0x17c   : > { %v1023_v11 = vadd.f32 %v2161_v53, %v1022_v32  ;;  %1677 = vmatprep.mubr.msk.f32.mxu0 %vm560_vm0, %v1075_v26  ;;  %802 = vadd.xlane.f32.xlu1 %v801_v34 }
 0x17d   : > { %1678 = vmatmul.mubr.msk.f32.gmra.mrb[12].mxu0 %vm560_vm0, %v1076_v10  ;;  %v1078_v15 = vmax.f32 %v1028_v31, 0.0 }
 0x17e   : > { %v1077_v36 = vmax.f32 %v1023_v11, 0.0  ;;  %v1653_v13 = vpop.f32.mrb[16].mxu1 }
 0x17f   : > { %v1038_v16 = vadd.f32 %v1653_v13, %v2161_v53  ;;  %v1032_v40 = vpop.f32.mrb[17].mxu1  ;;  %787 = vadd.xlane.f32.xlu0 %v786_v14  ;;  %v2238_v13 = vpop.xlane.xlu0 %851 }
 0x180   : > { %v1033_v44 = vadd.f32 %v2161_v53, %v1032_v40  ;;  %1680 = vmatprep.mubr.msk.f32.mxu0 %vm560_vm0, %v1077_v36  ;;  %784 = vadd.xlane.f32.xlu1 %v783_v41 }
 0x181   : > { %1681 = vmatmul.mubr.msk.f32.gmra.mrb[14].mxu0 %vm560_vm0, %v1078_v15  ;;  %v1080_v51 = vmax.f32 %v1038_v16, 0.0  ;;  %v2242_v16 = vpop.xlane.xlu1 %836 }
 0x182   : > { %v1079_v46 = vmax.f32 %v1033_v44, 0.0  ;;  %v1656_v49 = vpop.f32.mrb[18].mxu1 }
 0x183   : > { %v1048_v54 = vadd.f32 %v1656_v49, %v2161_v53  ;;  %v1042_v56 = vpop.f32.mrb[19].mxu1  ;;  %811 = vadd.xlane.f32.xlu0 %v810_v52 }
 0x184   : > { %v1043_v57 = vadd.f32 %v2161_v53, %v1042_v56  ;;  %1683 = vmatprep.mubr.msk.f32.mxu0 %vm560_vm0, %v1079_v46  ;;  %808 = vadd.xlane.f32.xlu1 %v807_v55  ;;  %v2250_v56 = vpop.xlane.xlu0 %857 }
 0x185   : > { %1684 = vmatmul.mubr.msk.f32.gmra.mrb[16].mxu0 %vm560_vm0, %v1080_v51  ;;  %v1082_v59 = vmax.f32 %v1048_v54, 0.0 }
 0x186   : > { %v1081_v58 = vmax.f32 %v1043_v57, 0.0  ;;  %v1659_v60 = vpop.f32.mrb[20].mxu1  ;;  %v2252_v57 = vpop.xlane.xlu1 %842 }
 0x187   : > { %v1058_v63 = vadd.f32 %v1659_v60, %v2161_v53  ;;  %v1052_v0 = vpop.f32.mrb[21].mxu1  ;;  %793 = vadd.xlane.f32.xlu0 %v792_v61 }
 0x188   : > { %v1053_v35 = vadd.f32 %v2161_v53, %v1052_v0  ;;  %1686 = vmatprep.mubr.msk.f32.mxu0 %vm560_vm0, %v1081_v58  ;;  %790 = vadd.xlane.f32.xlu1 %v789_v1 }
 0x189   : > { %1687 = vmatmul.mubr.msk.f32.gmra.mrb[18].mxu0 %vm560_vm0, %v1082_v59  ;;  %v1084_v3 = vmax.f32 %v1058_v63, 0.0 }
 0x18a   : > { %v1083_v48 = vmax.f32 %v1053_v35, 0.0  ;;  %v1662_v27 = vpop.f32.mrb[22].mxu1 }
 0x18b   : > { %v1068_v50 = vadd.f32 %v1662_v27, %v2161_v53  ;;  %v1062_v39 = vpop.f32.mrb[23].mxu1  ;;  %817 = vadd.xlane.f32.xlu0 %v816_v2 }
 0x18c   : > { %v1063_v4 = vadd.f32 %v2161_v53, %v1062_v39  ;;  %1689 = vmatprep.mubr.msk.f32.mxu0 %vm560_vm0, %v1083_v48  ;;  %814 = vadd.xlane.f32.xlu1 %v813_v30  ;;  %v2258_v48 = vpop.xlane.xlu0 %863 }
 0x18d   : > { %1690 = vmatmul.mubr.msk.f32.gmra.mrb[20].mxu0 %vm560_vm0, %v1084_v3  ;;  %v1086_v43 = vmax.f32 %v1068_v50, 0.0  ;;  %v2262_v50 = vpop.xlane.xlu1 %848 }
 0x18e   : > { %v1085_v5 = vmax.f32 %v1063_v4, 0.0 }
 0x190   : > { %1692 = vmatprep.mubr.msk.f32.mxu0 %vm560_vm0, %v1085_v5 }
 0x191   : > { %1693 = vmatmul.mubr.msk.f32.gmra.mrb[22].mxu0 %vm560_vm0, %v1086_v43 }
 0x248   : > { %v1673_v38 = vpop.f32.mrb[8].mxu0 }
 0x249   : > { %v1218_v53 = vadd.f32 %v1673_v38, %v2222_v6  ;;  %v1212_v8 = vpop.f32.mrb[9].mxu0 }
 0x24a   : > { %v1213_v17 = vadd.f32 %v2222_v6, %v1212_v8 }
 0x24b   : > { %v1292_v42 = vmax.f32 %v1218_v53, 0.0 }
 0x24c   : > { %v1291_v18 = vmax.f32 %v1213_v17, 0.0  ;;  %v1676_v19 = vpop.f32.mrb[10].mxu0 }
 0x24d   : > { %v1228_v20 = vadd.f32 %v1676_v19, %v2222_v6  ;;  %v1222_v21 = vpop.f32.mrb[11].mxu0  ;;  %v1310_v22 = vsel %vm560_vm0, %v1292_v42, 0.0 }
 0x24e   : > { %v1223_v25 = vadd.f32 %v2222_v6, %v1222_v21  ;;  %1311 = vadd.xlane.f32.xlu0 %v1310_v22  ;;  %v1307_v23 = vsel %vm560_vm0, %v1291_v18, 0.0  ;;  %v2270_v18 = vpop.xlane.xlu0 %869 }
 0x24f   : > { %v1294_v26 = vmax.f32 %v1228_v20, 0.0  ;;  %1308 = vadd.xlane.f32.xlu1 %v1307_v23  ;;  %v2272_v20 = vpop.xlane.xlu1 %854 }
 0x250   : > { %v1293_v28 = vmax.f32 %v1223_v25, 0.0  ;;  %v1679_v12 = vpop.f32.mrb[12].mxu0 }
 0x251   : > { %v1238_v29 = vadd.f32 %v1679_v12, %v2222_v6  ;;  %v1232_v10 = vpop.f32.mrb[13].mxu0  ;;  %v1316_v31 = vsel %vm560_vm0, %v1294_v26, 0.0 }
 0x252   : > { %v1233_v32 = vadd.f32 %v2222_v6, %v1232_v10  ;;  %1317 = vadd.xlane.f32.xlu0 %v1316_v31  ;;  %v1313_v34 = vsel %vm560_vm0, %v1293_v28, 0.0  ;;  %v2276_v23 = vpop.xlane.xlu0 %875 }
 0x253   : > { %v1296_v11 = vmax.f32 %v1238_v29, 0.0  ;;  %1314 = vadd.xlane.f32.xlu1 %v1313_v34  ;;  %v2278_v26 = vpop.xlane.xlu1 %860 }
 0x254   : > { %v1295_v9 = vmax.f32 %v1233_v32, 0.0  ;;  %v1682_v36 = vpop.f32.mrb[14].mxu0 }
 0x255   : > { %v1248_v14 = vadd.f32 %v1682_v36, %v2222_v6  ;;  %v1242_v37 = vpop.f32.mrb[15].mxu0  ;;  %v1322_v15 = vsel %vm560_vm0, %v1296_v11, 0.0 }
 0x256   : > { %v1243_v40 = vadd.f32 %v2222_v6, %v1242_v37  ;;  %1323 = vadd.xlane.f32.xlu0 %v1322_v15  ;;  %v1319_v41 = vsel %vm560_vm0, %v1295_v9, 0.0 }
 0x257   : > { %v1298_v44 = vmax.f32 %v1248_v14, 0.0  ;;  %1320 = vadd.xlane.f32.xlu1 %v1319_v41  ;;  %v2282_v28 = vpop.xlane.xlu1 %866 }
 0x258   : > { %v1297_v45 = vmax.f32 %v1243_v40, 0.0  ;;  %v1685_v46 = vpop.f32.mrb[16].mxu0 }
 0x259   : > { %v1258_v49 = vadd.f32 %v1685_v46, %v2222_v6  ;;  %v1252_v52 = vpop.f32.mrb[17].mxu0  ;;  %v1328_v47 = vsel %vm560_vm0, %v1298_v44, 0.0 }
 0x25a   : > { %v1253_v51 = vadd.f32 %v2222_v6, %v1252_v52  ;;  %1329 = vadd.xlane.f32.xlu0 %v1328_v47  ;;  %v1325_v54 = vsel %vm560_vm0, %v1297_v45, 0.0 }
 0x25b   : > { %v1300_v55 = vmax.f32 %v1258_v49, 0.0  ;;  %1326 = vadd.xlane.f32.xlu1 %v1325_v54  ;;  %v2284_v29 = vpop.xlane.xlu1 %872 }
 0x25c   : > { %v1299_v33 = vmax.f32 %v1253_v51, 0.0  ;;  %v1688_v58 = vpop.f32.mrb[18].mxu0 }
 0x25d   : > { %v1268_v60 = vadd.f32 %v1688_v58, %v2222_v6  ;;  %v1262_v61 = vpop.f32.mrb[19].mxu0  ;;  %v1334_v62 = vsel %vm560_vm0, %v1300_v55, 0.0 }
 0x25e   : > { %v1263_v59 = vadd.f32 %v2222_v6, %v1262_v61  ;;  %1335 = vadd.xlane.f32.xlu0 %v1334_v62  ;;  %v1331_v63 = vsel %vm560_vm0, %v1299_v33, 0.0 }
 0x25f   : > { %v1302_v0 = vmax.f32 %v1268_v60, 0.0  ;;  %1332 = vadd.xlane.f32.xlu1 %v1331_v63  ;;  %v2286_v31 = vpop.xlane.xlu1 %878 }
 0x260   : > { %v1301_v1 = vmax.f32 %v1263_v59, 0.0  ;;  %v1691_v35 = vpop.f32.mrb[20].mxu0 }
 0x261   : > { %v1278_v27 = vadd.f32 %v1691_v35, %v2222_v6  ;;  %v1272_v2 = vpop.f32.mrb[21].mxu0  ;;  %v1340_v3 = vsel %vm560_vm0, %v1302_v0, 0.0 }
 0x262   : > { %v1273_v39 = vadd.f32 %v2222_v6, %v1272_v2  ;;  %1341 = vadd.xlane.f32.xlu0 %v1340_v3  ;;  %v1337_v30 = vsel %vm560_vm0, %v1301_v1, 0.0 }
 0x263   : > { %v1304_v4 = vmax.f32 %v1278_v27, 0.0  ;;  %1338 = vadd.xlane.f32.xlu1 %v1337_v30  ;;  %v449_v34 = vpop.xlane.xlu1 %448 }
 0x264   : > { %v1303_v5 = vmax.f32 %v1273_v39, 0.0  ;;  %v1694_v43 = vpop.f32.mrb[22].mxu0 }
 0x265   : > { %v1288_v38 = vadd.f32 %v1694_v43, %v2222_v6  ;;  %v1282_v53 = vpop.f32.mrb[23].mxu0  ;;  %v1346_v8 = vsel %vm560_vm0, %v1304_v4, 0.0 }
 0x266   : > { %v1283_v17 = vadd.f32 %v2222_v6, %v1282_v53  ;;  %1347 = vadd.xlane.f32.xlu0 %v1346_v8  ;;  %v1343_v42 = vsel %vm560_vm0, %v1303_v5, 0.0  ;;  %v2280_v6 = vpop.xlane.xlu0 %881 }
 0x267   : > { %v1306_v19 = vmax.f32 %v1288_v38, 0.0  ;;  %1344 = vadd.xlane.f32.xlu1 %v1343_v42  ;;  %v2290_v9 = vpop.xlane.xlu1 %457 }
 0x268   : > { %v1305_v21 = vmax.f32 %v1283_v17, 0.0 }
 0x269   : > { %v1352_v22 = vsel %vm560_vm0, %v1306_v19, 0.0 }
 0x26a   : > { %1353 = vadd.xlane.f32.xlu0 %v1352_v22  ;;  %v1349_v25 = vsel %vm560_vm0, %v1305_v21, 0.0  ;;  %v446_v12 = vpop.xlane.xlu0 %445 }
 0x26b   : > { %1350 = vadd.xlane.f32.xlu1 %v1349_v25  ;;  %v2294_v14 = vpop.xlane.xlu1 %463 }
 0x26e   : > { %v452_v10 = vpop.xlane.xlu0 %451 }
 0x26f   : > { %v2298_v15 = vpop.xlane.xlu1 %469 }
 0x272   : > { %v455_v32 = vpop.xlane.xlu0 %454 }
 0x273   : > { %v2302_v41 = vpop.xlane.xlu1 %475 }
 0x276   : > { %v2288_v11 = vpop.xlane.xlu0 %460 }
 0x277   : > { %v2306_v45 = vpop.xlane.xlu1 %481 }
 0x27a   : > { %v2292_v36 = vpop.xlane.xlu0 %466 }
 0x27b   : > { %v2310_v49 = vpop.xlane.xlu1 %487 }
 0x27e   : > { %v2296_v37 = vpop.xlane.xlu0 %472 }
 0x27f   : > { %v773_v47 = vpop.xlane.xlu1 %772 }
 0x280   : > { %v883_v27 = vsub.f32 %v773_v47, %v2242_v16  ;;  %v2332_v16 = vstv %s1387_s19 }
 0x282   : > { %v2300_v40 = vpop.xlane.xlu0 %478  ;;  %v899_v39 = vmul.f32 0.5, %v883_v27 }
 0x283   : > { %v2312_v54 = vpop.xlane.xlu1 %796 }
 0x284   : > { %v1355_v42 = vadd.f32 %v899_v39, %v446_v12 }
 0x286   : > { %v2304_v44 = vpop.xlane.xlu0 %484 }
 0x287   : > { %v779_v33 = vpop.xlane.xlu1 %778 }
 0x288   : > { %v885_v30 = vsub.f32 %v779_v33, %v2252_v57 }
 0x28a   : > { %v2308_v46 = vpop.xlane.xlu0 %490 }
 0x28b   : > { %v2316_v60 = vpop.xlane.xlu1 %802 }
 0x28e   : > { %v776_v52 = vpop.xlane.xlu0 %775 }
 0x28f   : > { %v785_v62 = vpop.xlane.xlu1 %784  ;;  %v884_v1 = vsub.f32 %v776_v52, %v2224_v7  ;;  %v901_v7 = vmul.f32 0.5, %v885_v30 }
 0x290   : > { %v887_v8 = vsub.f32 %v785_v62, %v2262_v50 }
 0x291   : > { %v900_v2 = vmul.f32 0.5, %v884_v1  ;;  %v1357_v47 = vadd.f32 %v901_v7, %v452_v10 }
 0x292   : > { %v800_v51 = vpop.xlane.xlu0 %799  ;;  %v903_v25 = vmul.f32 0.5, %v887_v8 }
 0x293   : > { %v2320_v63 = vpop.xlane.xlu1 %808  ;;  %v1356_v53 = vadd.f32 %v900_v2, %v449_v34 }
 0x294   : > { %v1359_v27 = vadd.f32 %v903_v25, %v2290_v9  ;;  %v893_v9 = vsub.f32 %v2316_v60, %v2282_v28 }
 0x296   : > { %v782_v55 = vpop.xlane.xlu0 %781  ;;  %v909_v8 = vmul.f32 0.5, %v893_v9 }
 0x297   : > { %v791_v35 = vpop.xlane.xlu1 %790  ;;  %v886_v3 = vsub.f32 %v782_v55, %v2232_v24 }
 0x298   : > { %v889_v12 = vsub.f32 %v791_v35, %v2272_v20 }
 0x299   : > { %v902_v43 = vmul.f32 0.5, %v886_v3 }
 0x29a   : > { %v2314_v58 = vpop.xlane.xlu0 %805  ;;  %v905_v1 = vmul.f32 0.5, %v889_v12 }
 0x29b   : > { %v2328_v5 = vpop.xlane.xlu1 %814  ;;  %v1358_v22 = vadd.f32 %v902_v43, %v455_v32 }
 0x29e   : > { %v788_v61 = vpop.xlane.xlu0 %787 }
 0x29f   : > { %v888_v38 = vsub.f32 %v788_v61, %v2238_v13 }
 0x2a1   : > { %v904_v57 = vmul.f32 0.5, %v888_v38  ;;  %v1361_v38 = vadd.f32 %v905_v1, %v2294_v14  ;;  %v895_v14 = vsub.f32 %v2320_v63, %v2284_v29 }
 0x2a2   : > { %v2318_v59 = vpop.xlane.xlu0 %811 }
 0x2a3   : > { %v1360_v20 = vadd.f32 %v904_v57, %v2288_v11  ;;  %v894_v11 = vsub.f32 %v2314_v58, %v2270_v18  ;;  %v911_v57 = vmul.f32 0.5, %v895_v14 }
 0x2a5   : > { %v910_v58 = vmul.f32 0.5, %v894_v11 }
 0x2a6   : > { %v794_v0 = vpop.xlane.xlu0 %793 }
 0x2a7   : > { %v890_v21 = vsub.f32 %v794_v0, %v2250_v56  ;;  %v892_v56 = vsub.f32 %v800_v51, %v2258_v48  ;;  %v891_v0 = vsub.f32 %v2312_v54, %v2278_v26  ;;  %v1366_v63 = vadd.f32 %v910_v58, %v2300_v40 }
 0x2a9   : > { %v906_v62 = vmul.f32 0.5, %v890_v21  ;;  %v908_v3 = vmul.f32 0.5, %v892_v56  ;;  %v907_v39 = vmul.f32 0.5, %v891_v0 }
 0x2aa   : > { %v2326_v4 = vpop.xlane.xlu0 %817 }
 0x2ab   : > { %v1362_v54 = vadd.f32 %v906_v62, %v2292_v36  ;;  %v896_v36 = vsub.f32 %v2318_v59, %v2276_v23  ;;  %v1364_v60 = vadd.f32 %v908_v3, %v2296_v37  ;;  %v898_v37 = vsub.f32 %v2326_v4, %v2280_v6 }
 0x2ad   : > { %v912_v59 = vmul.f32 0.5, %v896_v36  ;;  %v914_v4 = vmul.f32 0.5, %v898_v37 }
 0x2db   : > { %v1312_v17 = vpop.xlane.xlu0 %1311 }
 0x2dc   : > { %v1372_v19 = vadd.f32 %v1356_v53, %v1312_v17  ;;  %v1309_v24 = vpop.xlane.xlu1 %1308 }
 0x2dd   : > { %v1371_v13 = vadd.f32 %v1355_v42, %v1309_v24 }
 0x2de   : > { %v1390_v50 = vadd.f32 %v2332_v16, %v1372_v19  ;;  %v1363_v19 = vadd.f32 %v907_v39, %v2298_v15  ;;  %v897_v15 = vsub.f32 %v2328_v5, %v2286_v31  ;;  %v1368_v31 = vadd.f32 %v912_v59, %v2304_v44 }
 0x2df   : > { %v1389_v34 = vadd.f32 %v2332_v16, %v1371_v13  ;;  %v1318_v52 = vpop.xlane.xlu0 %1317  ;;  %v1370_v44 = vadd.f32 %v914_v4, %v2308_v46 }
 0x2e0   : > { %1407 = vst.msk [vmem:[%s2339_s22 + $0x8] sm:$0xff] %vm1405_vm3, %v1390_v50  ;;  %v1374_v55 = vadd.f32 %v1358_v22, %v1318_v52  ;;  %v1315_v33 = vpop.xlane.xlu1 %1314  ;;  %v1365_v22 = vadd.f32 %v909_v8, %v2302_v41  ;;  %v913_v5 = vmul.f32 0.5, %v897_v15  ;;  %v1367_v41 = vadd.f32 %v911_v57, %v2306_v45 }
 0x2e1   : > { %1406 = vst.msk [vmem:[%s2339_s22] sm:$0xff] %vm1405_vm3, %v1389_v34  ;;  %v1373_v61 = vadd.f32 %v1357_v47, %v1315_v33 }
 0x2e2   : > { %v1392_v32 = vadd.f32 %v2332_v16, %v1374_v55 }
 0x2e3   : > { %v1391_v10 = vadd.f32 %v2332_v16, %v1373_v61  ;;  %v1324_v35 = vpop.xlane.xlu0 %1323 }
 0x2e4   : > { %1409 = vst.msk [vmem:[%s2339_s22 + $0x18] sm:$0xff] %vm1405_vm3, %v1392_v32  ;;  %v1376_v2 = vadd.f32 %v1360_v20, %v1324_v35  ;;  %v1321_v48 = vpop.xlane.xlu1 %1320  ;;  %v1369_v32 = vadd.f32 %v913_v5, %v2310_v49 }
 0x2e5   : > { %1408 = vst.msk [vmem:[%s2339_s22 + $0x10] sm:$0xff] %vm1405_vm3, %v1391_v10  ;;  %v1375_v51 = vadd.f32 %v1359_v27, %v1321_v48 }
 0x2e6   : > { %v1394_v26 = vadd.f32 %v2332_v16, %v1376_v2 }
 0x2e7   : > { %v1393_v30 = vadd.f32 %v2332_v16, %v1375_v51  ;;  %v1330_v43 = vpop.xlane.xlu0 %1329 }
 0x2e8   : > { %1411 = vst.msk [vmem:[%s2339_s22 + $0x28] sm:$0xff] %vm1405_vm3, %v1394_v26  ;;  %v1378_v53 = vadd.f32 %v1362_v54, %v1330_v43  ;;  %v1327_v7 = vpop.xlane.xlu1 %1326 }
 0x2e9   : > { %1410 = vst.msk [vmem:[%s2339_s22 + $0x20] sm:$0xff] %vm1405_vm3, %v1393_v30  ;;  %v1377_v18 = vadd.f32 %v1361_v38, %v1327_v7 }
 0x2ea   : > { %v1396_v28 = vadd.f32 %v2332_v16, %v1378_v53 }
 0x2eb   : > { %v1395_v17 = vadd.f32 %v2332_v16, %v1377_v18  ;;  %v1336_v42 = vpop.xlane.xlu0 %1335 }
 0x2ec   : > { %1413 = vst.msk [vmem:[%s2339_s22 + $0x38] sm:$0xff] %vm1405_vm3, %v1396_v28  ;;  %v1380_v24 = vadd.f32 %v1364_v60, %v1336_v42  ;;  %v1333_v13 = vpop.xlane.xlu1 %1332 }
 0x2ed   : > { %1412 = vst.msk [vmem:[%s2339_s22 + $0x30] sm:$0xff] %vm1405_vm3, %v1395_v17  ;;  %v1379_v23 = vadd.f32 %v1363_v19, %v1333_v13 }
 0x2ee   : > { %v1398_v29 = vadd.f32 %v2332_v16, %v1380_v24 }
 0x2ef   : > { %v1397_v21 = vadd.f32 %v2332_v16, %v1379_v23  ;;  %v1342_v50 = vpop.xlane.xlu0 %1341 }
 0x2f0   : > { %1415 = vst.msk [vmem:[%s2339_s22 + $0x48] sm:$0xff] %vm1405_vm3, %v1398_v29  ;;  %v1382_v25 = vadd.f32 %v1366_v63, %v1342_v50  ;;  %v1339_v12 = vpop.xlane.xlu1 %1338 }
 0x2f1   : > { %1414 = vst.msk [vmem:[%s2339_s22 + $0x40] sm:$0xff] %vm1405_vm3, %v1397_v21  ;;  %v1381_v6 = vadd.f32 %v1365_v22, %v1339_v12 }
 0x2f2   : > { %v1400_v40 = vadd.f32 %v2332_v16, %v1382_v25 }
 0x2f3   : > { %v1399_v34 = vadd.f32 %v2332_v16, %v1381_v6  ;;  %v1348_v52 = vpop.xlane.xlu0 %1347 }
 0x2f4   : > { %1417 = vst.msk [vmem:[%s2339_s22 + $0x58] sm:$0xff] %vm1405_vm3, %v1400_v40  ;;  %v1384_v47 = vadd.f32 %v1368_v31, %v1348_v52  ;;  %v1345_v55 = vpop.xlane.xlu1 %1344 }
 0x2f5   : > { %1416 = vst.msk [vmem:[%s2339_s22 + $0x50] sm:$0xff] %vm1405_vm3, %v1399_v34  ;;  %v1383_v33 = vadd.f32 %v1367_v41, %v1345_v55 }
 0x2f6   : > { %v1402_v61 = vadd.f32 %v2332_v16, %v1384_v47 }
 0x2f7   : > { %v1401_v56 = vadd.f32 %v2332_v16, %v1383_v33  ;;  %v1354_v62 = vpop.xlane.xlu0 %1353 }
 0x2f8   : > { %1419 = vst.msk [vmem:[%s2339_s22 + $0x68] sm:$0xff] %vm1405_vm3, %v1402_v61  ;;  %v1386_v45 = vadd.f32 %v1370_v44, %v1354_v62  ;;  %v1351_v20 = vpop.xlane.xlu1 %1350 }
 0x2f9   : > { %1418 = vst.msk [vmem:[%s2339_s22 + $0x60] sm:$0xff] %vm1405_vm3, %v1401_v56  ;;  %v1385_v0 = vadd.f32 %v1369_v32, %v1351_v20 }
 0x2fa   : > { %v1404_v1 = vadd.f32 %v2332_v16, %v1386_v45 }
 0x2fb   : > { %v1403_v10 = vadd.f32 %v2332_v16, %v1385_v0 }
 0x2fc   : > { %1421 = vst.msk [vmem:[%s2339_s22 + $0x78] sm:$0xff] %vm1405_vm3, %v1404_v1 }
 0x2fd   : > { %1420 = vst.msk [vmem:[%s2339_s22 + $0x70] sm:$0xff] %vm1405_vm3, %v1403_v10 }
 0x2fe PF: > { %s18_s26 = sadd.s32 1, %s1740_s26  }
 0x2ff   : > { %p15_p4 = scmp.ge.s32.totalorder %s18_s26, 4  }
 0x301   :  { %17 = sbr.rel (!%p15_p4) target bundleno = 2 (0x2), region = 78 }

</bundles_post_ra>
